<compile_context>
chip_gen: v5e
topology: v5e:2x2
jax: 0.10.0
libtpu: 0.0.40
codegen_flags: <defaults>
</compile_context>

<pallas_src>
import jax
import jax.numpy as jnp
from jax import lax
from jax.experimental import pallas as pl
from jax.experimental.pallas import tpu as pltpu


# ----------------------------------------------------------------------------
# Generic Pallas kernel: M-tiled matmul + (per-column) bias, weights resident.
# Used for conv1 (im2col) and the final reducer conv.
# ----------------------------------------------------------------------------
def _matmul_bias_kernel(a_ref, b_ref, bias_ref, o_ref):
    acc = jnp.dot(a_ref[...], b_ref[...], preferred_element_type=jnp.float32)
    o_ref[...] = (acc + bias_ref[...]).astype(o_ref.dtype)


def matmul_bias(a, b, bias, *, tm, out_dtype=jnp.bfloat16):
    """a:(M,K) @ b:(K,N) + bias:(N,) -> (M,N).  bf16 in, f32 accumulate."""
    M, K = a.shape
    K2, N = b.shape
    assert K == K2, (K, K2)
    Mp = pl.cdiv(M, tm) * tm
    a = a.astype(jnp.bfloat16)
    if Mp != M:
        a = jnp.pad(a, ((0, Mp - M), (0, 0)))
    b = b.astype(jnp.bfloat16)
    bias2 = bias.reshape(1, N).astype(jnp.float32)

    out = pl.pallas_call(
        _matmul_bias_kernel,
        out_shape=jax.ShapeDtypeStruct((Mp, N), out_dtype),
        grid=(Mp // tm,),
        in_specs=[
            pl.BlockSpec((tm, K), lambda i: (i, 0)),   # A tile (M-tiled, full K)
            pl.BlockSpec((K, N), lambda i: (0, 0)),    # weight matrix, resident
            pl.BlockSpec((1, N), lambda i: (0, 0)),    # bias row, resident
        ],
        out_specs=pl.BlockSpec((tm, N), lambda i: (i, 0)),
        compiler_params=pltpu.CompilerParams(dimension_semantics=("parallel",)),
    )(a, b, bias2)
    return out[:M] if Mp != M else out


# ----------------------------------------------------------------------------
# Layer 1: Conv2d(1,64,k3,s2,p1) as im2col + matmul, NHWC bf16 output.
# ----------------------------------------------------------------------------
def conv1_op(x, w, b):
    """x:(B,H,W) -> NHWC (B,H/2,W/2,64) bf16."""
    B, H, W = x.shape
    OH, OW = (H + 2 - 3) // 2 + 1, (W + 2 - 3) // 2 + 1
    xp = jnp.pad(x.astype(jnp.bfloat16), ((0, 0), (1, 1), (1, 1)))
    cols = [xp[:, ky:ky + 2 * OH:2, kx:kx + 2 * OW:2]
            for ky in range(3) for kx in range(3)]
    A = jnp.stack(cols, axis=-1).reshape(B * OH * OW, 9)
    A = jnp.pad(A, ((0, 0), (0, 7)))                       # K 9 -> 16 alignment
    Wm = jnp.pad(w.reshape(64, 9).T, ((0, 7), (0, 0)))     # (16, 64)
    y = matmul_bias(A, Wm, b, tm=3840)                     # grid = 10 steps (B=2)
    return y.reshape(B, OH, OW, 64)


# ----------------------------------------------------------------------------
# Layer 2+3 fused: sub-pixel ConvTranspose2d(64,64,3,2,1,1) + Linear(768,96),
# emitted directly in the "transposed" orientation Linear2 needs.
# Per batch element everything stays in VMEM (no HBM deconv intermediate).
# ----------------------------------------------------------------------------
_HIN, _WIN, _C = 50, 384, 64     # conv1 output spatial dims / channels
_PB = 5                          # p-rows processed per inner chunk


def _middle_kernel(ypair_ref, wsub_ref, w1e_ref, bias_ref, t1_ref, z_scr):
    # ypair_ref: (51, 384, 128) bf16  [p, q, (dx, ci)]   (row 50 is zero pad)
    # wsub_ref : (256, 256)     bf16  rows (dy, dx, ci), cols (ex, ey, co)
    # w1e_ref  : (2, 96, 384)   bf16  [ex, n1, q]      W1e[ex][n1,q] = W1[n1,2q+ex]
    # bias_ref : (96, 128)      f32   [n1, (ey, co)]   folded Linear1+deconv bias
    # t1_ref   : (50, 96, 128)  bf16  [p, n1, (ey, co)] output
    # z_scr    : (PB*384, 256)  bf16  per-chunk deconv output scratch
    wsub = wsub_ref[...]
    w1a = w1e_ref[0]
    w1b = w1e_ref[1]
    bias = bias_ref[...]
    nchunk = _HIN // _PB

    def chunk_body(c, _):
        p0 = c * _PB
        # dy taps via leading-dim slices (dx taps already side by side in lanes)
        y0 = ypair_ref[pl.ds(p0, _PB), :, :]          # (PB, 384, 128)  dy = 0
        y1 = ypair_ref[pl.ds(p0 + 1, _PB), :, :]      # (PB, 384, 128)  dy = 1
        a = jnp.concatenate([y0, y1], axis=-1)        # (PB, 384, 256)  K=(dy,dx,ci)
        a2 = a.reshape(_PB * _WIN, 4 * _C)
        z = jnp.dot(a2, wsub, preferred_element_type=jnp.float32)   # sub-pixel deconv
        z_scr[...] = z.astype(jnp.bfloat16)

        def p_body(pp, __):
            q0 = pl.multiple_of(pp * _WIN, _WIN)
            zp = z_scr[pl.ds(q0, _WIN), :]            # (384, 256) rows=q, cols=(ex,ey,co)
            # Linear(768,96): weight on the LEFT, contraction over q (and ex via
            # the two lane halves) -> no activation transpose anywhere.
            t1 = jnp.dot(w1a, zp[:, :128], preferred_element_type=jnp.float32)
            t1 = t1 + jnp.dot(w1b, zp[:, 128:], preferred_element_type=jnp.float32)
            t1 = (t1 + bias).astype(t1_ref.dtype)     # (96, 128) [n1, (ey, co)]
            t1_ref[p0 + pp, :, :] = t1
            return 0

        lax.fori_loop(0, _PB, p_body, 0)
        return 0

    lax.fori_loop(0, nchunk, chunk_body, 0)


def deconv_linear1_op(y, deconv_w, deconv_b, lin1_w, lin1_b):
    """y NHWC (B,50,384,64) -> T1 (B,50,96,128) bf16 with
       T1[b,p,n1, ey*64+co] = Linear1(ConvTranspose(conv1_out))[b, co, 2p+ey, n1]."""
    B = y.shape[0]
    assert y.shape[1:] == (_HIN, _WIN, _C), y.shape
    Cin, Cout = deconv_w.shape[0], deconv_w.shape[1]

    # Sub-pixel deconv weights: rows (dy,dx,ci), cols (ex,ey,co).
    # Derived from oi = 2i + ky - 1, oj = 2j + kx - 1 (stride 2, padding 1).
    ws6 = jnp.zeros((2, 2, Cin, 2, 2, Cout), jnp.float32)   # [dy,dx,ci, ex,ey,co]
    phase_taps = {
        (0, 0): [(0, 0, 1, 1)],
        (0, 1): [(0, 1, 1, 0), (0, 0, 1, 2)],
        (1, 0): [(1, 0, 0, 1), (0, 0, 2, 1)],
        (1, 1): [(1, 1, 0, 0), (1, 0, 0, 2), (0, 1, 2, 0), (0, 0, 2, 2)],
    }
    for (ey, ex), lst in phase_taps.items():
        for dy, dx, ky, kx in lst:
            ws6 = ws6.at[dy, dx, :, ex, ey, :].set(
                deconv_w[:, :, ky, kx].astype(jnp.float32))
    wsub = ws6.reshape(4 * Cin, 4 * Cout).astype(jnp.bfloat16)

    # Linear1 weights split by output-width phase ex (trace-time permutation).
    w1e = jnp.stack([lin1_w[:, 0::2], lin1_w[:, 1::2]], axis=0).astype(jnp.bfloat16)
    # Fold Linear1 bias + deconv bias: bias[n1, ey*64+co] = b1[n1] + S1[n1]*b_dec[co].
    s1 = jnp.sum(lin1_w, axis=1)
    bias_t1 = (lin1_b[:, None] + s1[:, None] * jnp.tile(deconv_b, 2)[None, :]
               ).astype(jnp.float32)

    # Lane-dense tap tensor: [.., 0:64] = y, [.., 64:128] = y shifted one col (q+1),
    # plus one zero pad row for the p+1 taps.  Read exactly once by the kernel.
    # TODO(synk): build the q+1-shifted half in-kernel (sublane roll) to save
    # one small XLA copy (~10 MB of HBM traffic).
    ypad = jnp.pad(y, ((0, 0), (0, 1), (0, 0), (0, 0)))
    yqs = jnp.pad(y[:, :, 1:, :], ((0, 0), (0, 1), (0, 1), (0, 0)))
    ypair = jnp.concatenate([ypad, yqs], axis=-1).astype(jnp.bfloat16)  # (B,51,384,128)

    return pl.pallas_call(
        _middle_kernel,
        out_shape=jax.ShapeDtypeStruct((B, _HIN, 96, 128), jnp.bfloat16),
        grid=(B,),
        in_specs=[
            pl.BlockSpec((None, _HIN + 1, _WIN, 2 * _C), lambda b: (b, 0, 0, 0)),
            pl.BlockSpec((4 * _C, 4 * _C), lambda b: (0, 0)),
            pl.BlockSpec((2, 96, _WIN), lambda b: (0, 0, 0)),
            pl.BlockSpec((96, 128), lambda b: (0, 0)),
        ],
        out_specs=pl.BlockSpec((None, _HIN, 96, 128), lambda b: (b, 0, 0, 0)),
        scratch_shapes=[pltpu.VMEM((_PB * _WIN, 4 * _C), jnp.bfloat16)],
        compiler_params=pltpu.CompilerParams(
            dimension_semantics=("parallel",),
            vmem_limit_bytes=32 * 1024 * 1024),
    )(ypair, wsub, w1e, bias_t1)


# ----------------------------------------------------------------------------
# Layer 4: Linear(100,96) (after the transpose(-1,-2)) — weight on the left,
# one (96,100)@(100,6144) matmul per batch element.
# ----------------------------------------------------------------------------
def _lin2_kernel(x_ref, w_ref, b_ref, o_ref):
    acc = jnp.dot(w_ref[...], x_ref[...], preferred_element_type=jnp.float32)
    o_ref[...] = (acc + b_ref[...]).astype(o_ref.dtype)


def linear2_op(t1, lin2_w, lin2_b):
    """t1:(B,50,96,128) [p,n1,(ey,co)] -> Y:(B,96,6144) [n2,(n1,co)]."""
    B = t1.shape[0]
    # rows h' = ey*50+p (cheap 2.5 MB XLA shuffle), cols (n1, co) (free reshape)
    x = t1.reshape(B, _HIN, 96, 2, _C).transpose(0, 3, 1, 2, 4)
    x = x.reshape(B, 2 * _HIN, 96 * _C).astype(jnp.bfloat16)
    # permute Linear2 columns to the same h' = ey*50+p order (h = 2p+ey originally)
    w2p = lin2_w.reshape(96, _HIN, 2).transpose(0, 2, 1).reshape(96, 2 * _HIN)
    w2p = w2p.astype(jnp.bfloat16)
    b2c = lin2_b.reshape(96, 1).astype(jnp.float32)

    return pl.pallas_call(
        _lin2_kernel,
        out_shape=jax.ShapeDtypeStruct((B, 96, 96 * _C), jnp.bfloat16),
        grid=(B,),
        in_specs=[
            pl.BlockSpec((None, 2 * _HIN, 96 * _C), lambda b: (b, 0, 0)),
            pl.BlockSpec((96, 2 * _HIN), lambda b: (0, 0)),
            pl.BlockSpec((96, 1), lambda b: (0, 0)),
        ],
        out_specs=pl.BlockSpec((None, 96, 96 * _C), lambda b: (b, 0, 0)),
        compiler_params=pltpu.CompilerParams(dimension_semantics=("parallel",)),
    )(x, w2p, b2c)


# ----------------------------------------------------------------------------
# Layer 5: reducer Conv2d(64,128,k2,s2).  Non-overlapping 2x2 windows ->
# im2col is a reshape/transpose of a small bf16 tensor, then one matmul.
# TODO(synk): im2col + final NCHW transpose still run in XLA (~15 MB traffic).
# ----------------------------------------------------------------------------
def reducer_op(ylin_flat, w, b):
    """ylin_flat:(B,96,6144) [n2,(n1,co)] == ylin[b,co,n1,n2] -> (B,128,48,48) f32."""
    B = ylin_flat.shape[0]
    O = w.shape[0]
    yr = ylin_flat.reshape(B, 48, 2, 48, 2, _C)                # [b, sW, j, rH, i, co]
    A = yr.transpose(0, 3, 1, 4, 2, 5).reshape(B * 48 * 48, 4 * _C)  # rows (b,rH,sW), K (i,j,co)
    Wm = w.transpose(2, 3, 1, 0).reshape(4 * _C, O)            # [(i,j,co), o]
    out = matmul_bias(A, Wm, b, tm=2304, out_dtype=jnp.float32)  # grid = 2 steps (B=2)
    return out.reshape(B, 48, 48, O).transpose(0, 3, 1, 2)


# ----------------------------------------------------------------------------
# ReshapeCNN parameters + forward
# ----------------------------------------------------------------------------
def init_params(key):
    ks = jax.random.split(key, 10)

    def uni(k, shape, fan_in):
        bound = 1.0 / jnp.sqrt(fan_in)
        return jax.random.uniform(k, shape, jnp.float32, -bound, bound)

    return {
        "conv1_w":  uni(ks[0], (64, 1, 3, 3), 1 * 3 * 3),
        "conv1_b":  uni(ks[1], (64,), 1 * 3 * 3),
        "deconv_w": uni(ks[2], (64, 64, 3, 3), 64 * 3 * 3),   # (Cin, Cout, kh, kw)
        "deconv_b": uni(ks[3], (64,), 64 * 3 * 3),
        "lin1_w":   uni(ks[4], (96, 768), 768),
        "lin1_b":   uni(ks[5], (96,), 768),
        "lin2_w":   uni(ks[6], (96, 100), 100),
        "lin2_b":   uni(ks[7], (96,), 100),
        # TODO(synk): PyTorch builds `reducer` with fresh random weights inside
        # forward(); here they are fixed once at init (deterministic).
        "red_w":    uni(ks[8], (128, 64, 2, 2), 64 * 2 * 2),
        "red_b":    uni(ks[9], (128,), 64 * 2 * 2),
    }


@jax.jit
def reshape_cnn_forward(params, x):
    # x: (B, 100, 768).  unsqueeze(1) is implicit: conv1 has Cin=1.
    y = conv1_op(x, params["conv1_w"], params["conv1_b"])          # (B,50,384,64) NHWC
    t1 = deconv_linear1_op(y, params["deconv_w"], params["deconv_b"],
                           params["lin1_w"], params["lin1_b"])     # (B,50,96,128)
    yl = linear2_op(t1, params["lin2_w"], params["lin2_b"])        # (B,96,6144)
    out = reducer_op(yl, params["red_w"], params["red_b"])         # (B,128,48,48) f32
    return out


if __name__ == "__main__":
    key = jax.random.PRNGKey(0)
    k_param, k_x = jax.random.split(key)
    params = init_params(k_param)
    # Smallest shape consistent with the module: Linear(768,...) forces W=768,
    # Linear(100,...) forces H=100; batch=2.
    x = jax.random.normal(k_x, (2, 100, 768), jnp.float32)

    out = reshape_cnn_forward(params, x)
    out = jax.block_until_ready(out)

    assert out.shape == (2, 128, 48, 48), out.shape
    assert bool(jnp.all(jnp.isfinite(out)))
    print("KERNEL_OK")
</pallas_src>

<mosaic_0001>
module attributes {stable_mosaic.version = 11 : i64} {
  func.func @_matmul_bias_kernel(%arg0: i32, %arg1: memref<3840x16xbf16, #tpu.memory_space<vmem>>, %arg2: memref<16x64xbf16, #tpu.memory_space<vmem>>, %arg3: memref<1x64xf32, #tpu.memory_space<vmem>>, %arg4: memref<3840x64xbf16, #tpu.memory_space<vmem>>) attributes {dimension_semantics = [#tpu.dimension_semantics<parallel>], iteration_bounds = array<i64: 10>, scalar_prefetch = 0 : i64, scratch_operands = 0 : i64, tpu.core_type = #tpu.core_type<tc>, window_params = [{transform_indices = @transform_0, window_bounds = array<i64: 3840, 16>}, {pipeline_mode = #tpu.pipeline_mode<synchronous>, transform_indices = @transform_1, window_bounds = array<i64: 16, 64>}, {pipeline_mode = #tpu.pipeline_mode<synchronous>, transform_indices = @transform_2, window_bounds = array<i64: 1, 64>}, {transform_indices = @transform_3, window_bounds = array<i64: 3840, 64>}]} {
    %c0 = arith.constant 0 : index
    %c0_0 = arith.constant 0 : index
    %0 = vector.load %arg1[%c0, %c0_0] : memref<3840x16xbf16, #tpu.memory_space<vmem>>, vector<3840x16xbf16>
    %c0_1 = arith.constant 0 : index
    %c0_2 = arith.constant 0 : index
    %1 = vector.load %arg2[%c0_1, %c0_2] : memref<16x64xbf16, #tpu.memory_space<vmem>>, vector<16x64xbf16>
    %cst = arith.constant dense<0.000000e+00> : vector<3840x64xf32>
    %2 = tpu.matmul %0, %1, %cst {dimension_numbers = #tpu.dot_dimension_numbers<[1], [0], [0], [1], [0, 0, 1, 1], [], []>} : vector<3840x16xbf16>, vector<16x64xbf16>, vector<3840x64xf32> -> vector<3840x64xf32>
    %c0_3 = arith.constant 0 : index
    %c0_4 = arith.constant 0 : index
    %3 = vector.load %arg3[%c0_3, %c0_4] : memref<1x64xf32, #tpu.memory_space<vmem>>, vector<1x64xf32>
    %4 = vector.broadcast %3 : vector<1x64xf32> to vector<3840x64xf32>
    %5 = arith.addf %2, %4 : vector<3840x64xf32>
    %6 = arith.truncf %5 : vector<3840x64xf32> to vector<3840x64xbf16>
    %c0_5 = arith.constant 0 : index
    %c0_6 = arith.constant 0 : index
    %7 = vector.load %arg4[%c0_5, %c0_6] : memref<3840x64xbf16, #tpu.memory_space<vmem>>, vector<3840x64xbf16>
    tpu.vector_store %arg4[%c0_5, %c0_6], %6 {strides = array<i32>} : memref<3840x64xbf16, #tpu.memory_space<vmem>>, vector<3840x64xbf16>,
    return
  }
  func.func @transform_0(%arg0: i32) -> (i32, i32) {
    %c0_i32 = arith.constant 0 : i32
    %c0_i32_0 = arith.constant 0 : i32
    return %arg0, %c0_i32 : i32, i32
  }
  func.func @transform_1(%arg0: i32) -> (i32, i32) {
    %c0_i32 = arith.constant 0 : i32
    %c0_i32_0 = arith.constant 0 : i32
    %c0_i32_1 = arith.constant 0 : i32
    return %c0_i32, %c0_i32_0 : i32, i32
  }
  func.func @transform_2(%arg0: i32) -> (i32, i32) {
    %c0_i32 = arith.constant 0 : i32
    %c0_i32_0 = arith.constant 0 : i32
    %c0_i32_1 = arith.constant 0 : i32
    return %c0_i32, %c0_i32_0 : i32, i32
  }
  func.func @transform_3(%arg0: i32) -> (i32, i32) {
    %c0_i32 = arith.constant 0 : i32
    %c0_i32_0 = arith.constant 0 : i32
    return %arg0, %c0_i32 : i32, i32
  }
}

module attributes {stable_mosaic.version = 11 : i64} {
  func.func @_middle_kernel(%arg0: i32, %arg1: memref<1x51x384x128xbf16, #tpu.memory_space<vmem>>, %arg2: memref<256x256xbf16, #tpu.memory_space<vmem>>, %arg3: memref<2x96x384xbf16, #tpu.memory_space<vmem>>, %arg4: memref<96x128xf32, #tpu.memory_space<vmem>>, %arg5: memref<1x50x96x128xbf16, #tpu.memory_space<vmem>>, %arg6: memref<1920x256xbf16, #tpu.memory_space<vmem>>) attributes {dimension_semantics = [#tpu.dimension_semantics<parallel>], iteration_bounds = array<i64: 2>, scalar_prefetch = 0 : i64, scratch_operands = 1 : i64, tpu.core_type = #tpu.core_type<tc>, window_params = [{transform_indices = @transform_0, window_bounds = array<i64: 1, 51, 384, 128>}, {pipeline_mode = #tpu.pipeline_mode<synchronous>, transform_indices = @transform_1, window_bounds = array<i64: 256, 256>}, {pipeline_mode = #tpu.pipeline_mode<synchronous>, transform_indices = @transform_2, window_bounds = array<i64: 2, 96, 384>}, {pipeline_mode = #tpu.pipeline_mode<synchronous>, transform_indices = @transform_3, window_bounds = array<i64: 96, 128>}, {transform_indices = @transform_4, window_bounds = array<i64: 1, 50, 96, 128>}]} {
    %c0 = arith.constant 0 : index
    %c0_0 = arith.constant 0 : index
    %0 = vector.load %arg2[%c0, %c0_0] : memref<256x256xbf16, #tpu.memory_space<vmem>>, vector<256x256xbf16>
    %c0_1 = arith.constant 0 : index
    %c0_2 = arith.constant 0 : index
    %c0_3 = arith.constant 0 : index
    %1 = vector.load %arg3[%c0_1, %c0_2, %c0_3] : memref<2x96x384xbf16, #tpu.memory_space<vmem>>, vector<1x96x384xbf16>
    %2 = vector.shape_cast %1 : vector<1x96x384xbf16> to vector<96x384xbf16>
    %c1 = arith.constant 1 : index
    %c0_4 = arith.constant 0 : index
    %c0_5 = arith.constant 0 : index
    %3 = vector.load %arg3[%c1, %c0_4, %c0_5] : memref<2x96x384xbf16, #tpu.memory_space<vmem>>, vector<1x96x384xbf16>
    %4 = vector.shape_cast %3 : vector<1x96x384xbf16> to vector<96x384xbf16>
    %c0_6 = arith.constant 0 : index
    %c0_7 = arith.constant 0 : index
    %5 = vector.load %arg4[%c0_6, %c0_7] : memref<96x128xf32, #tpu.memory_space<vmem>>, vector<96x128xf32>
    %c0_i32 = arith.constant 0 : i32
    %c10_i32 = arith.constant 10 : i32
    %6 = arith.addi %c0_i32, %c10_i32 : i32
    %c1_i32 = arith.constant 1 : i32
    scf.for %arg7 = %c0_i32 to %6 step %c1_i32  : i32 {
      %c5_i32 = arith.constant 5 : i32
      %7 = arith.muli %arg7, %c5_i32 : i32
      %c0_9 = arith.constant 0 : index
      %8 = arith.index_cast %7 : i32 to index
      %c0_10 = arith.constant 0 : index
      %c0_11 = arith.constant 0 : index
      %9 = vector.load %arg1[%c0_9, %8, %c0_10, %c0_11] : memref<1x51x384x128xbf16, #tpu.memory_space<vmem>>, vector<1x5x384x128xbf16>
      %10 = vector.shape_cast %9 : vector<1x5x384x128xbf16> to vector<5x384x128xbf16>
      %c1_i32_12 = arith.constant 1 : i32
      %11 = arith.addi %7, %c1_i32_12 : i32
      %c0_13 = arith.constant 0 : index
      %12 = arith.index_cast %11 : i32 to index
      %c0_14 = arith.constant 0 : index
      %c0_15 = arith.constant 0 : index
      %13 = vector.load %arg1[%c0_13, %12, %c0_14, %c0_15] : memref<1x51x384x128xbf16, #tpu.memory_space<vmem>>, vector<1x5x384x128xbf16>
      %14 = vector.shape_cast %13 : vector<1x5x384x128xbf16> to vector<5x384x128xbf16>
      %15 = tpu.concatenate %10, %14 in 2 : vector<5x384x128xbf16>, vector<5x384x128xbf16> -> vector<5x384x256xbf16>
      %16 = vector.shape_cast %15 : vector<5x384x256xbf16> to vector<1920x256xbf16>
      %cst = arith.constant dense<0.000000e+00> : vector<1920x256xf32>
      %17 = tpu.matmul %16, %0, %cst {dimension_numbers = #tpu.dot_dimension_numbers<[1], [0], [0], [1], [0, 0, 1, 1], [], []>} : vector<1920x256xbf16>, vector<256x256xbf16>, vector<1920x256xf32> -> vector<1920x256xf32>
      %18 = arith.truncf %17 : vector<1920x256xf32> to vector<1920x256xbf16>
      %c0_16 = arith.constant 0 : index
      %c0_17 = arith.constant 0 : index
      %19 = vector.load %arg6[%c0_16, %c0_17] : memref<1920x256xbf16, #tpu.memory_space<vmem>>, vector<1920x256xbf16>
      tpu.vector_store %arg6[%c0_16, %c0_17], %18 {strides = array<i32>} : memref<1920x256xbf16, #tpu.memory_space<vmem>>, vector<1920x256xbf16>,
      %c0_i32_18 = arith.constant 0 : i32
      %c5_i32_19 = arith.constant 5 : i32
      %20 = arith.addi %c0_i32_18, %c5_i32_19 : i32
      %c1_i32_20 = arith.constant 1 : i32
      scf.for %arg8 = %c0_i32_18 to %20 step %c1_i32_20  : i32 {
        %c384_i32 = arith.constant 384 : i32
        %21 = arith.muli %arg8, %c384_i32 : i32
        %22 = tpu.assume_multiple %21, 384 : i32
        %23 = arith.index_cast %22 : i32 to index
        %c0_22 = arith.constant 0 : index
        %24 = vector.load %arg6[%23, %c0_22] : memref<1920x256xbf16, #tpu.memory_space<vmem>>, vector<384x256xbf16>
        %25 = vector.extract_strided_slice %24 {offsets = [0, 0], sizes = [384, 128], strides = [1, 1]} : vector<384x256xbf16> to vector<384x128xbf16>
        %cst_23 = arith.constant dense<0.000000e+00> : vector<96x128xf32>
        %26 = tpu.matmul %2, %25, %cst_23 {dimension_numbers = #tpu.dot_dimension_numbers<[1], [0], [0], [1], [0, 0, 1, 1], [], []>} : vector<96x384xbf16>, vector<384x128xbf16>, vector<96x128xf32> -> vector<96x128xf32>
        %27 = vector.extract_strided_slice %24 {offsets = [0, 128], sizes = [384, 128], strides = [1, 1]} : vector<384x256xbf16> to vector<384x128xbf16>
        %cst_24 = arith.constant dense<0.000000e+00> : vector<96x128xf32>
        %28 = tpu.matmul %4, %27, %cst_24 {dimension_numbers = #tpu.dot_dimension_numbers<[1], [0], [0], [1], [0, 0, 1, 1], [], []>} : vector<96x384xbf16>, vector<384x128xbf16>, vector<96x128xf32> -> vector<96x128xf32>
        %29 = arith.addf %26, %28 : vector<96x128xf32>
        %30 = arith.addf %29, %5 : vector<96x128xf32>
        %31 = arith.truncf %30 : vector<96x128xf32> to vector<96x128xbf16>
        %32 = arith.addi %7, %arg8 : i32
        %c0_25 = arith.constant 0 : index
        %33 = arith.index_cast %32 : i32 to index
        %c0_26 = arith.constant 0 : index
        %c0_27 = arith.constant 0 : index
        %34 = vector.load %arg5[%c0_25, %33, %c0_26, %c0_27] : memref<1x50x96x128xbf16, #tpu.memory_space<vmem>>, vector<1x1x96x128xbf16>
        %35 = vector.shape_cast %34 : vector<1x1x96x128xbf16> to vector<96x128xbf16>
        %36 = vector.shape_cast %31 : vector<96x128xbf16> to vector<1x1x96x128xbf16>
        tpu.vector_store %arg5[%c0_25, %33, %c0_26, %c0_27], %36 {strides = array<i32>} : memref<1x50x96x128xbf16, #tpu.memory_space<vmem>>, vector<1x1x96x128xbf16>,
      }
      %c5_i32_21 = arith.constant 5 : i32
    }
    %c10_i32_8 = arith.constant 10 : i32
    return
  }
  func.func @transform_0(%arg0: i32) -> (i32, i32, i32, i32) {
    %c0_i32 = arith.constant 0 : i32
    %c0_i32_0 = arith.constant 0 : i32
    %c0_i32_1 = arith.constant 0 : i32
    %c0_i32_2 = arith.constant 0 : i32
    return %arg0, %c0_i32, %c0_i32_0, %c0_i32_1 : i32, i32, i32, i32
  }
  func.func @transform_1(%arg0: i32) -> (i32, i32) {
    %c0_i32 = arith.constant 0 : i32
    %c0_i32_0 = arith.constant 0 : i32
    %c0_i32_1 = arith.constant 0 : i32
    return %c0_i32, %c0_i32_0 : i32, i32
  }
  func.func @transform_2(%arg0: i32) -> (i32, i32, i32) {
    %c0_i32 = arith.constant 0 : i32
    %c0_i32_0 = arith.constant 0 : i32
    %c0_i32_1 = arith.constant 0 : i32
    %c0_i32_2 = arith.constant 0 : i32
    return %c0_i32, %c0_i32_0, %c0_i32_1 : i32, i32, i32
  }
  func.func @transform_3(%arg0: i32) -> (i32, i32) {
    %c0_i32 = arith.constant 0 : i32
    %c0_i32_0 = arith.constant 0 : i32
    %c0_i32_1 = arith.constant 0 : i32
    return %c0_i32, %c0_i32_0 : i32, i32
  }
  func.func @transform_4(%arg0: i32) -> (i32, i32, i32, i32) {
    %c0_i32 = arith.constant 0 : i32
    %c0_i32_0 = arith.constant 0 : i32
    %c0_i32_1 = arith.constant 0 : i32
    %c0_i32_2 = arith.constant 0 : i32
    return %arg0, %c0_i32, %c0_i32_0, %c0_i32_1 : i32, i32, i32, i32
  }
}

module attributes {stable_mosaic.version = 11 : i64} {
  func.func @_lin2_kernel(%arg0: i32, %arg1: memref<1x100x6144xbf16, #tpu.memory_space<vmem>>, %arg2: memref<96x100xbf16, #tpu.memory_space<vmem>>, %arg3: memref<96x1xf32, #tpu.memory_space<vmem>>, %arg4: memref<1x96x6144xbf16, #tpu.memory_space<vmem>>) attributes {dimension_semantics = [#tpu.dimension_semantics<parallel>], iteration_bounds = array<i64: 2>, scalar_prefetch = 0 : i64, scratch_operands = 0 : i64, tpu.core_type = #tpu.core_type<tc>, window_params = [{transform_indices = @transform_0, window_bounds = array<i64: 1, 100, 6144>}, {pipeline_mode = #tpu.pipeline_mode<synchronous>, transform_indices = @transform_1, window_bounds = array<i64: 96, 100>}, {pipeline_mode = #tpu.pipeline_mode<synchronous>, transform_indices = @transform_2, window_bounds = array<i64: 96, 1>}, {transform_indices = @transform_3, window_bounds = array<i64: 1, 96, 6144>}]} {
    %c0 = arith.constant 0 : index
    %c0_0 = arith.constant 0 : index
    %0 = vector.load %arg2[%c0, %c0_0] : memref<96x100xbf16, #tpu.memory_space<vmem>>, vector<96x100xbf16>
    %c0_1 = arith.constant 0 : index
    %c0_2 = arith.constant 0 : index
    %c0_3 = arith.constant 0 : index
    %1 = vector.load %arg1[%c0_1, %c0_2, %c0_3] : memref<1x100x6144xbf16, #tpu.memory_space<vmem>>, vector<1x100x6144xbf16>
    %2 = vector.shape_cast %1 : vector<1x100x6144xbf16> to vector<100x6144xbf16>
    %cst = arith.constant dense<0.000000e+00> : vector<96x6144xf32>
    %3 = tpu.matmul %0, %2, %cst {dimension_numbers = #tpu.dot_dimension_numbers<[1], [0], [0], [1], [0, 0, 1, 1], [], []>} : vector<96x100xbf16>, vector<100x6144xbf16>, vector<96x6144xf32> -> vector<96x6144xf32>
    %c0_4 = arith.constant 0 : index
    %c0_5 = arith.constant 0 : index
    %4 = vector.load %arg3[%c0_4, %c0_5] : memref<96x1xf32, #tpu.memory_space<vmem>>, vector<96x1xf32>
    %5 = vector.broadcast %4 : vector<96x1xf32> to vector<96x6144xf32>
    %6 = arith.addf %3, %5 : vector<96x6144xf32>
    %7 = arith.truncf %6 : vector<96x6144xf32> to vector<96x6144xbf16>
    %c0_6 = arith.constant 0 : index
    %c0_7 = arith.constant 0 : index
    %c0_8 = arith.constant 0 : index
    %8 = vector.load %arg4[%c0_6, %c0_7, %c0_8] : memref<1x96x6144xbf16, #tpu.memory_space<vmem>>, vector<1x96x6144xbf16>
    %9 = vector.shape_cast %8 : vector<1x96x6144xbf16> to vector<96x6144xbf16>
    %10 = vector.shape_cast %7 : vector<96x6144xbf16> to vector<1x96x6144xbf16>
    tpu.vector_store %arg4[%c0_6, %c0_7, %c0_8], %10 {strides = array<i32>} : memref<1x96x6144xbf16, #tpu.memory_space<vmem>>, vector<1x96x6144xbf16>,
    return
  }
  func.func @transform_0(%arg0: i32) -> (i32, i32, i32) {
    %c0_i32 = arith.constant 0 : i32
    %c0_i32_0 = arith.constant 0 : i32
    %c0_i32_1 = arith.constant 0 : i32
    return %arg0, %c0_i32, %c0_i32_0 : i32, i32, i32
  }
  func.func @transform_1(%arg0: i32) -> (i32, i32) {
    %c0_i32 = arith.constant 0 : i32
    %c0_i32_0 = arith.constant 0 : i32
    %c0_i32_1 = arith.constant 0 : i32
    return %c0_i32, %c0_i32_0 : i32, i32
  }
  func.func @transform_2(%arg0: i32) -> (i32, i32) {
    %c0_i32 = arith.constant 0 : i32
    %c0_i32_0 = arith.constant 0 : i32
    %c0_i32_1 = arith.constant 0 : i32
    return %c0_i32, %c0_i32_0 : i32, i32
  }
  func.func @transform_3(%arg0: i32) -> (i32, i32, i32) {
    %c0_i32 = arith.constant 0 : i32
    %c0_i32_0 = arith.constant 0 : i32
    %c0_i32_1 = arith.constant 0 : i32
    return %arg0, %c0_i32, %c0_i32_0 : i32, i32, i32
  }
}

module attributes {stable_mosaic.version = 11 : i64} {
  func.func @_matmul_bias_kernel(%arg0: i32, %arg1: memref<2304x256xbf16, #tpu.memory_space<vmem>>, %arg2: memref<256x128xbf16, #tpu.memory_space<vmem>>, %arg3: memref<1x128xf32, #tpu.memory_space<vmem>>, %arg4: memref<2304x128xf32, #tpu.memory_space<vmem>>) attributes {dimension_semantics = [#tpu.dimension_semantics<parallel>], iteration_bounds = array<i64: 2>, scalar_prefetch = 0 : i64, scratch_operands = 0 : i64, tpu.core_type = #tpu.core_type<tc>, window_params = [{transform_indices = @transform_0, window_bounds = array<i64: 2304, 256>}, {pipeline_mode = #tpu.pipeline_mode<synchronous>, transform_indices = @transform_1, window_bounds = array<i64: 256, 128>}, {pipeline_mode = #tpu.pipeline_mode<synchronous>, transform_indices = @transform_2, window_bounds = array<i64: 1, 128>}, {transform_indices = @transform_3, window_bounds = array<i64: 2304, 128>}]} {
    %c0 = arith.constant 0 : index
    %c0_0 = arith.constant 0 : index
    %0 = vector.load %arg1[%c0, %c0_0] : memref<2304x256xbf16, #tpu.memory_space<vmem>>, vector<2304x256xbf16>
    %c0_1 = arith.constant 0 : index
    %c0_2 = arith.constant 0 : index
    %1 = vector.load %arg2[%c0_1, %c0_2] : memref<256x128xbf16, #tpu.memory_space<vmem>>, vector<256x128xbf16>
    %cst = arith.constant dense<0.000000e+00> : vector<2304x128xf32>
    %2 = tpu.matmul %0, %1, %cst {dimension_numbers = #tpu.dot_dimension_numbers<[1], [0], [0], [1], [0, 0, 1, 1], [], []>} : vector<2304x256xbf16>, vector<256x128xbf16>, vector<2304x128xf32> -> vector<2304x128xf32>
    %c0_3 = arith.constant 0 : index
    %c0_4 = arith.constant 0 : index
    %3 = vector.load %arg3[%c0_3, %c0_4] : memref<1x128xf32, #tpu.memory_space<vmem>>, vector<1x128xf32>
    %4 = vector.broadcast %3 : vector<1x128xf32> to vector<2304x128xf32>
    %5 = arith.addf %2, %4 : vector<2304x128xf32>
    %c0_5 = arith.constant 0 : index
    %c0_6 = arith.constant 0 : index
    %6 = vector.load %arg4[%c0_5, %c0_6] : memref<2304x128xf32, #tpu.memory_space<vmem>>, vector<2304x128xf32>
    tpu.vector_store %arg4[%c0_5, %c0_6], %5 {strides = array<i32>} : memref<2304x128xf32, #tpu.memory_space<vmem>>, vector<2304x128xf32>,
    return
  }
  func.func @transform_0(%arg0: i32) -> (i32, i32) {
    %c0_i32 = arith.constant 0 : i32
    %c0_i32_0 = arith.constant 0 : i32
    return %arg0, %c0_i32 : i32, i32
  }
  func.func @transform_1(%arg0: i32) -> (i32, i32) {
    %c0_i32 = arith.constant 0 : i32
    %c0_i32_0 = arith.constant 0 : i32
    %c0_i32_1 = arith.constant 0 : i32
    return %c0_i32, %c0_i32_0 : i32, i32
  }
  func.func @transform_2(%arg0: i32) -> (i32, i32) {
    %c0_i32 = arith.constant 0 : i32
    %c0_i32_0 = arith.constant 0 : i32
    %c0_i32_1 = arith.constant 0 : i32
    return %c0_i32, %c0_i32_0 : i32, i32
  }
  func.func @transform_3(%arg0: i32) -> (i32, i32) {
    %c0_i32 = arith.constant 0 : i32
    %c0_i32_0 = arith.constant 0 : i32
    return %arg0, %c0_i32 : i32, i32
  }
}

</mosaic_0001>

<bundles_post_ra>
// kernel: tile.8
= control target key start
LH: loop header
LB: loop body
LE: loop exit
PB: predicated region body
PF: predicated region fallthrough
CT: control target
= control target key end

     0   :  { %s22_s0 = inlined_call_operand.vmem [shape: f32[64], index: 0, kind: input, shape index: {}]   ;;  %s23_s1 = inlined_call_operand.vmem [shape: f32[2,64], index: 1, kind: output, shape index: {}]  }
   0x1   :  { %v4_v0 = vld [vmem:[%s22_s0] ss:$0 sm:$0xff] }
   0x2   :  { %5 = vst [vmem:[%s23_s1] sm:$0x3] %v4_v0 }

// kernel: mul.11
= control target key start
LH: loop header
LB: loop body
LE: loop exit
PB: predicated region body
PF: predicated region fallthrough
CT: control target
= control target key end

     0   :  { %vm7_vm0 = vcmask 523264   ;;  %vm13_vm1 = vcmask 1048064   ;;  %s39_s0 = inlined_call_operand.vmem [shape: f32[2,64], index: 0, kind: input, shape index: {}]   ;;  %s40_s1 = inlined_call_operand.vmem [shape: f32[128], index: 1, kind: output, shape index: {}]  }
   0x1   :  { %v4_v0 = vld [vmem:[%s39_s0] sm:$0x3]  ;;  %s22_s0 = smov 64  }
   0x2   :  { %5 = vst [vmem:[#allocation1] sm:$0x3] %v4_v0 }
   0x9   :  { %v10_v1 = vld [vmem:[#allocation1 + $0x1] sm:$0x1]   ;;  %v6_v2 = vld [vmem:[#allocation1] sm:$0x1]  }
   0xa   :  { %11 = vrot.lane.b32.xlu0 %v10_v1, %s22_s0  ;;  %8 = vst.msk [vmem:[#allocation0] sm:$0x1] %vm7_vm0, %v6_v2  }
  0x7c   :  { %v12_v3 = vpop.permute.xlu0 %11  }
  0x7d   :  { %14 = vst.msk [vmem:[#allocation0] sm:$0x1] %vm13_vm1, %v12_v3  }
  0x84   :  { %v17_v4 = vld [vmem:[#allocation0] sm:$0x1] }
  0x85   :  { %20 = vst [vmem:[%s40_s1] sm:$0x1] %v17_v4 }

</bundles_post_ra>
